<compile_context>
chip_gen: v7x
topology: tpu7x:2x2x1
jax: 0.10.0
libtpu: 0.0.40
codegen_flags: <defaults>
</compile_context>

<pallas_src>
import functools

import jax
import jax.numpy as jnp
from jax.experimental import pallas as pl
from jax.experimental.pallas import tpu as pltpu


def _conv_relu_kernel(x_ref, w_ref, b_ref, o_ref, rhs_ref, *, kh, kw, wp, l_pad):
    # x_ref   : (N, C_in, Lf)            bf16  padded + spatially-flattened input
    # w_ref   : (C_out, kh*kw*C_in)      bf16  taps stacked along the K axis
    # b_ref   : (C_out, 1)               f32
    # o_ref   : (N, C_out, l_pad)        f32   lane-dense output (l_pad % 128 == 0)
    # rhs_ref : (kh*kw*C_in, N*l_pad)    bf16  VMEM scratch for the stacked rhs
    n, c_in, _ = x_ref.shape
    c_out = o_ref.shape[1]

    # Build the stacked im2col rhs in VMEM: one (C_in, l_pad) slab per tap and
    # image, taken as a statically shifted lane-slice of the flat padded input.
    for img in range(n):                     # static unrolled (N = 2)
        col0 = img * l_pad
        for i in range(kh):                  # static unrolled 3x3 taps
            for j in range(kw):
                t = i * kw + j
                shift = i * wp + j           # static lane offset for this tap
                rhs_ref[t * c_in:(t + 1) * c_in, col0:col0 + l_pad] = (
                    x_ref[img, :, shift:shift + l_pad])

    # One fused MXU matmul (K = kh*kw*C_in) covering the whole batch,
    # f32 accumulation, bias folded in via a single hoisted broadcast.
    bias = jnp.broadcast_to(b_ref[...], (c_out, n * l_pad))
    acc = jnp.dot(w_ref[...], rhs_ref[...],
                  preferred_element_type=jnp.float32) + bias
    out = jnp.maximum(acc, 0.0).astype(o_ref.dtype)       # (C_out, N*l_pad)

    # Lane-dense, 128-aligned stores (unmasked vst).
    for img in range(n):
        o_ref[img] = out[:, img * l_pad:(img + 1) * l_pad]


def conv2d_relu_pallas(x, weight, bias, pad=1):
    """x: (N, C_in, H, W) f32; weight: (C_out, C_in, kh, kw); bias: (C_out,)."""
    N, C_in, H, W = x.shape
    C_out, _, kh, kw = weight.shape
    assert 2 * pad == kh - 1 and 2 * pad == kw - 1, "kernel assumes 'same' conv"

    HP, WP = H + 2 * pad, W + 2 * pad
    L_out = H * WP                          # valid output extent (padded row stride)
    L_pad = pl.cdiv(L_out, 128) * 128       # lane-dense per-image output extent
    max_shift = (kh - 1) * WP + (kw - 1)
    need = L_pad + max_shift                # every tap's l_pad-wide slice in-bounds
    extra_rows = max(0, -(-(need - HP * WP) // WP))
    Lf = (HP + extra_rows) * WP

    # Single fused pad + bf16 cast + flatten of the activation (one XLA pass).
    xf = jnp.pad(x.astype(jnp.bfloat16),
                 ((0, 0), (0, 0), (pad, pad + extra_rows), (pad, pad))
                 ).reshape(N, C_in, Lf)
    # (C_out, C_in, kh, kw) -> (C_out, kh*kw*C_in), matching the rhs row order
    # used in the kernel: row = (i*kw + j) * C_in + c.
    w2 = (weight.transpose(0, 2, 3, 1)
          .reshape(C_out, kh * kw * C_in)
          .astype(jnp.bfloat16))
    b2 = bias.reshape(C_out, 1).astype(jnp.float32)

    kernel = functools.partial(_conv_relu_kernel, kh=kh, kw=kw, wp=WP, l_pad=L_pad)

    out_flat = pl.pallas_call(
        kernel,
        out_shape=jax.ShapeDtypeStruct((N, C_out, L_pad), x.dtype),
        in_specs=[
            pl.BlockSpec(memory_space=pltpu.MemorySpace.VMEM),   # activation
            pl.BlockSpec(memory_space=pltpu.MemorySpace.VMEM),   # weights
            pl.BlockSpec(memory_space=pltpu.MemorySpace.VMEM),   # bias
        ],
        out_specs=pl.BlockSpec(memory_space=pltpu.MemorySpace.VMEM),
        scratch_shapes=[pltpu.VMEM((kh * kw * C_in, N * L_pad), jnp.bfloat16)],
    )(xf, w2, b2)

    # (N, C_out, L_pad) -> slice valid extent -> (N, C_out, H, WP) -> drop pad cols.
    return out_flat[:, :, :L_out].reshape(N, C_out, H, WP)[:, :, :, :W]


def conv2d_relu_ref(x, weight, bias, pad=1):
    # Pure-JAX reference (same bf16 inputs / f32 accumulation as the kernel).
    out = jax.lax.conv_general_dilated(
        x.astype(jnp.bfloat16), weight.astype(jnp.bfloat16),
        window_strides=(1, 1), padding=((pad, pad), (pad, pad)),
        dimension_numbers=("NCHW", "OIHW", "NCHW"),
        preferred_element_type=jnp.float32)
    out = out + bias.reshape(1, -1, 1, 1)
    return jnp.maximum(out, 0.0)


class Dummy:
    """JAX/Pallas equivalent of the PyTorch Dummy wrapper."""

    def __init__(self, block):
        self.block = block
        self.idem = False

    def __call__(self, x):
        if self.idem:
            return x
        return self.block(x)


if __name__ == "__main__":
    key = jax.random.PRNGKey(0)
    kx, kw_, kb = jax.random.split(key, 3)

    # Small shapes consistent with a conv block: N=2, C_in=4, H=W=16, C_out=8, k=3.
    N, C_in, H, W = 2, 4, 16, 16
    C_out, kh, kwid = 8, 3, 3

    x = jax.random.normal(kx, (N, C_in, H, W), dtype=jnp.float32)
    weight = jax.random.normal(kw_, (C_out, C_in, kh, kwid), dtype=jnp.float32) * 0.1
    bias = jax.random.normal(kb, (C_out,), dtype=jnp.float32) * 0.1

    block = lambda inp: conv2d_relu_pallas(inp, weight, bias, pad=1)
    model = Dummy(block)

    out = jax.block_until_ready(model(x))
    assert out.shape == (N, C_out, H, W), out.shape

    # correctness vs. pure-JAX reference
    ref = jax.block_until_ready(conv2d_relu_ref(x, weight, bias, pad=1))
    assert jnp.allclose(out, ref, rtol=2e-2, atol=2e-2), float(jnp.max(jnp.abs(out - ref)))

    # also exercise the idem branch (pure passthrough, no kernel)
    model.idem = True
    y = jax.block_until_ready(model(x))
    assert y.shape == x.shape
    assert jnp.array_equal(y, x)

    print("KERNEL_OK")
</pallas_src>

<mosaic_0001>
module attributes {stable_mosaic.version = 11 : i64} {
  func.func @_conv_relu_kernel(%arg0: memref<2x4x432xbf16, #tpu.memory_space<vmem>>, %arg1: memref<8x36xbf16, #tpu.memory_space<vmem>>, %arg2: memref<8x1xf32, #tpu.memory_space<vmem>>, %arg3: memref<2x8x384xf32, #tpu.memory_space<vmem>>, %arg4: memref<36x768xbf16, #tpu.memory_space<vmem>>) attributes {dimension_semantics = [], scalar_prefetch = 0 : i64, scratch_operands = 1 : i64, tpu.core_type = #tpu.core_type<tc>} {
    %c0 = arith.constant 0 : index
    %c0_0 = arith.constant 0 : index
    %c0_1 = arith.constant 0 : index
    %0 = vector.load %arg0[%c0, %c0_0, %c0_1] : memref<2x4x432xbf16, #tpu.memory_space<vmem>>, vector<1x4x384xbf16>
    %1 = vector.shape_cast %0 : vector<1x4x384xbf16> to vector<4x384xbf16>
    %c0_2 = arith.constant 0 : index
    %c0_3 = arith.constant 0 : index
    %2 = vector.load %arg4[%c0_2, %c0_3] : memref<36x768xbf16, #tpu.memory_space<vmem>>, vector<4x384xbf16>
    tpu.vector_store %arg4[%c0_2, %c0_3], %1 {strides = array<i32>} : memref<36x768xbf16, #tpu.memory_space<vmem>>, vector<4x384xbf16>,
    %c0_4 = arith.constant 0 : index
    %c0_5 = arith.constant 0 : index
    %c1 = arith.constant 1 : index
    %3 = vector.load %arg0[%c0_4, %c0_5, %c1] : memref<2x4x432xbf16, #tpu.memory_space<vmem>>, vector<1x4x384xbf16>
    %4 = vector.shape_cast %3 : vector<1x4x384xbf16> to vector<4x384xbf16>
    %c4 = arith.constant 4 : index
    %c0_6 = arith.constant 0 : index
    %5 = vector.load %arg4[%c4, %c0_6] : memref<36x768xbf16, #tpu.memory_space<vmem>>, vector<4x384xbf16>
    tpu.vector_store %arg4[%c4, %c0_6], %4 {strides = array<i32>} : memref<36x768xbf16, #tpu.memory_space<vmem>>, vector<4x384xbf16>,
    %c0_7 = arith.constant 0 : index
    %c0_8 = arith.constant 0 : index
    %c2 = arith.constant 2 : index
    %6 = vector.load %arg0[%c0_7, %c0_8, %c2] : memref<2x4x432xbf16, #tpu.memory_space<vmem>>, vector<1x4x384xbf16>
    %7 = vector.shape_cast %6 : vector<1x4x384xbf16> to vector<4x384xbf16>
    %c8 = arith.constant 8 : index
    %c0_9 = arith.constant 0 : index
    %8 = vector.load %arg4[%c8, %c0_9] : memref<36x768xbf16, #tpu.memory_space<vmem>>, vector<4x384xbf16>
    tpu.vector_store %arg4[%c8, %c0_9], %7 {strides = array<i32>} : memref<36x768xbf16, #tpu.memory_space<vmem>>, vector<4x384xbf16>,
    %c0_10 = arith.constant 0 : index
    %c0_11 = arith.constant 0 : index
    %c18 = arith.constant 18 : index
    %9 = vector.load %arg0[%c0_10, %c0_11, %c18] : memref<2x4x432xbf16, #tpu.memory_space<vmem>>, vector<1x4x384xbf16>
    %10 = vector.shape_cast %9 : vector<1x4x384xbf16> to vector<4x384xbf16>
    %c12 = arith.constant 12 : index
    %c0_12 = arith.constant 0 : index
    %11 = vector.load %arg4[%c12, %c0_12] : memref<36x768xbf16, #tpu.memory_space<vmem>>, vector<4x384xbf16>
    tpu.vector_store %arg4[%c12, %c0_12], %10 {strides = array<i32>} : memref<36x768xbf16, #tpu.memory_space<vmem>>, vector<4x384xbf16>,
    %c0_13 = arith.constant 0 : index
    %c0_14 = arith.constant 0 : index
    %c19 = arith.constant 19 : index
    %12 = vector.load %arg0[%c0_13, %c0_14, %c19] : memref<2x4x432xbf16, #tpu.memory_space<vmem>>, vector<1x4x384xbf16>
    %13 = vector.shape_cast %12 : vector<1x4x384xbf16> to vector<4x384xbf16>
    %c16 = arith.constant 16 : index
    %c0_15 = arith.constant 0 : index
    %14 = vector.load %arg4[%c16, %c0_15] : memref<36x768xbf16, #tpu.memory_space<vmem>>, vector<4x384xbf16>
    tpu.vector_store %arg4[%c16, %c0_15], %13 {strides = array<i32>} : memref<36x768xbf16, #tpu.memory_space<vmem>>, vector<4x384xbf16>,
    %c0_16 = arith.constant 0 : index
    %c0_17 = arith.constant 0 : index
    %c20 = arith.constant 20 : index
    %15 = vector.load %arg0[%c0_16, %c0_17, %c20] : memref<2x4x432xbf16, #tpu.memory_space<vmem>>, vector<1x4x384xbf16>
    %16 = vector.shape_cast %15 : vector<1x4x384xbf16> to vector<4x384xbf16>
    %c20_18 = arith.constant 20 : index
    %c0_19 = arith.constant 0 : index
    %17 = vector.load %arg4[%c20_18, %c0_19] : memref<36x768xbf16, #tpu.memory_space<vmem>>, vector<4x384xbf16>
    tpu.vector_store %arg4[%c20_18, %c0_19], %16 {strides = array<i32>} : memref<36x768xbf16, #tpu.memory_space<vmem>>, vector<4x384xbf16>,
    %c0_20 = arith.constant 0 : index
    %c0_21 = arith.constant 0 : index
    %c36 = arith.constant 36 : index
    %18 = vector.load %arg0[%c0_20, %c0_21, %c36] : memref<2x4x432xbf16, #tpu.memory_space<vmem>>, vector<1x4x384xbf16>
    %19 = vector.shape_cast %18 : vector<1x4x384xbf16> to vector<4x384xbf16>
    %c24 = arith.constant 24 : index
    %c0_22 = arith.constant 0 : index
    %20 = vector.load %arg4[%c24, %c0_22] : memref<36x768xbf16, #tpu.memory_space<vmem>>, vector<4x384xbf16>
    tpu.vector_store %arg4[%c24, %c0_22], %19 {strides = array<i32>} : memref<36x768xbf16, #tpu.memory_space<vmem>>, vector<4x384xbf16>,
    %c0_23 = arith.constant 0 : index
    %c0_24 = arith.constant 0 : index
    %c37 = arith.constant 37 : index
    %21 = vector.load %arg0[%c0_23, %c0_24, %c37] : memref<2x4x432xbf16, #tpu.memory_space<vmem>>, vector<1x4x384xbf16>
    %22 = vector.shape_cast %21 : vector<1x4x384xbf16> to vector<4x384xbf16>
    %c28 = arith.constant 28 : index
    %c0_25 = arith.constant 0 : index
    %23 = vector.load %arg4[%c28, %c0_25] : memref<36x768xbf16, #tpu.memory_space<vmem>>, vector<4x384xbf16>
    tpu.vector_store %arg4[%c28, %c0_25], %22 {strides = array<i32>} : memref<36x768xbf16, #tpu.memory_space<vmem>>, vector<4x384xbf16>,
    %c0_26 = arith.constant 0 : index
    %c0_27 = arith.constant 0 : index
    %c38 = arith.constant 38 : index
    %24 = vector.load %arg0[%c0_26, %c0_27, %c38] : memref<2x4x432xbf16, #tpu.memory_space<vmem>>, vector<1x4x384xbf16>
    %25 = vector.shape_cast %24 : vector<1x4x384xbf16> to vector<4x384xbf16>
    %c32 = arith.constant 32 : index
    %c0_28 = arith.constant 0 : index
    %26 = vector.load %arg4[%c32, %c0_28] : memref<36x768xbf16, #tpu.memory_space<vmem>>, vector<4x384xbf16>
    tpu.vector_store %arg4[%c32, %c0_28], %25 {strides = array<i32>} : memref<36x768xbf16, #tpu.memory_space<vmem>>, vector<4x384xbf16>,
    %c1_29 = arith.constant 1 : index
    %c0_30 = arith.constant 0 : index
    %c0_31 = arith.constant 0 : index
    %27 = vector.load %arg0[%c1_29, %c0_30, %c0_31] : memref<2x4x432xbf16, #tpu.memory_space<vmem>>, vector<1x4x384xbf16>
    %28 = vector.shape_cast %27 : vector<1x4x384xbf16> to vector<4x384xbf16>
    %c0_32 = arith.constant 0 : index
    %c384 = arith.constant 384 : index
    %29 = vector.load %arg4[%c0_32, %c384] : memref<36x768xbf16, #tpu.memory_space<vmem>>, vector<4x384xbf16>
    tpu.vector_store %arg4[%c0_32, %c384], %28 {strides = array<i32>} : memref<36x768xbf16, #tpu.memory_space<vmem>>, vector<4x384xbf16>,
    %c1_33 = arith.constant 1 : index
    %c0_34 = arith.constant 0 : index
    %c1_35 = arith.constant 1 : index
    %30 = vector.load %arg0[%c1_33, %c0_34, %c1_35] : memref<2x4x432xbf16, #tpu.memory_space<vmem>>, vector<1x4x384xbf16>
    %31 = vector.shape_cast %30 : vector<1x4x384xbf16> to vector<4x384xbf16>
    %c4_36 = arith.constant 4 : index
    %c384_37 = arith.constant 384 : index
    %32 = vector.load %arg4[%c4_36, %c384_37] : memref<36x768xbf16, #tpu.memory_space<vmem>>, vector<4x384xbf16>
    tpu.vector_store %arg4[%c4_36, %c384_37], %31 {strides = array<i32>} : memref<36x768xbf16, #tpu.memory_space<vmem>>, vector<4x384xbf16>,
    %c1_38 = arith.constant 1 : index
    %c0_39 = arith.constant 0 : index
    %c2_40 = arith.constant 2 : index
    %33 = vector.load %arg0[%c1_38, %c0_39, %c2_40] : memref<2x4x432xbf16, #tpu.memory_space<vmem>>, vector<1x4x384xbf16>
    %34 = vector.shape_cast %33 : vector<1x4x384xbf16> to vector<4x384xbf16>
    %c8_41 = arith.constant 8 : index
    %c384_42 = arith.constant 384 : index
    %35 = vector.load %arg4[%c8_41, %c384_42] : memref<36x768xbf16, #tpu.memory_space<vmem>>, vector<4x384xbf16>
    tpu.vector_store %arg4[%c8_41, %c384_42], %34 {strides = array<i32>} : memref<36x768xbf16, #tpu.memory_space<vmem>>, vector<4x384xbf16>,
    %c1_43 = arith.constant 1 : index
    %c0_44 = arith.constant 0 : index
    %c18_45 = arith.constant 18 : index
    %36 = vector.load %arg0[%c1_43, %c0_44, %c18_45] : memref<2x4x432xbf16, #tpu.memory_space<vmem>>, vector<1x4x384xbf16>
    %37 = vector.shape_cast %36 : vector<1x4x384xbf16> to vector<4x384xbf16>
    %c12_46 = arith.constant 12 : index
    %c384_47 = arith.constant 384 : index
    %38 = vector.load %arg4[%c12_46, %c384_47] : memref<36x768xbf16, #tpu.memory_space<vmem>>, vector<4x384xbf16>
    tpu.vector_store %arg4[%c12_46, %c384_47], %37 {strides = array<i32>} : memref<36x768xbf16, #tpu.memory_space<vmem>>, vector<4x384xbf16>,
    %c1_48 = arith.constant 1 : index
    %c0_49 = arith.constant 0 : index
    %c19_50 = arith.constant 19 : index
    %39 = vector.load %arg0[%c1_48, %c0_49, %c19_50] : memref<2x4x432xbf16, #tpu.memory_space<vmem>>, vector<1x4x384xbf16>
    %40 = vector.shape_cast %39 : vector<1x4x384xbf16> to vector<4x384xbf16>
    %c16_51 = arith.constant 16 : index
    %c384_52 = arith.constant 384 : index
    %41 = vector.load %arg4[%c16_51, %c384_52] : memref<36x768xbf16, #tpu.memory_space<vmem>>, vector<4x384xbf16>
    tpu.vector_store %arg4[%c16_51, %c384_52], %40 {strides = array<i32>} : memref<36x768xbf16, #tpu.memory_space<vmem>>, vector<4x384xbf16>,
    %c1_53 = arith.constant 1 : index
    %c0_54 = arith.constant 0 : index
    %c20_55 = arith.constant 20 : index
    %42 = vector.load %arg0[%c1_53, %c0_54, %c20_55] : memref<2x4x432xbf16, #tpu.memory_space<vmem>>, vector<1x4x384xbf16>
    %43 = vector.shape_cast %42 : vector<1x4x384xbf16> to vector<4x384xbf16>
    %c20_56 = arith.constant 20 : index
    %c384_57 = arith.constant 384 : index
    %44 = vector.load %arg4[%c20_56, %c384_57] : memref<36x768xbf16, #tpu.memory_space<vmem>>, vector<4x384xbf16>
    tpu.vector_store %arg4[%c20_56, %c384_57], %43 {strides = array<i32>} : memref<36x768xbf16, #tpu.memory_space<vmem>>, vector<4x384xbf16>,
    %c1_58 = arith.constant 1 : index
    %c0_59 = arith.constant 0 : index
    %c36_60 = arith.constant 36 : index
    %45 = vector.load %arg0[%c1_58, %c0_59, %c36_60] : memref<2x4x432xbf16, #tpu.memory_space<vmem>>, vector<1x4x384xbf16>
    %46 = vector.shape_cast %45 : vector<1x4x384xbf16> to vector<4x384xbf16>
    %c24_61 = arith.constant 24 : index
    %c384_62 = arith.constant 384 : index
    %47 = vector.load %arg4[%c24_61, %c384_62] : memref<36x768xbf16, #tpu.memory_space<vmem>>, vector<4x384xbf16>
    tpu.vector_store %arg4[%c24_61, %c384_62], %46 {strides = array<i32>} : memref<36x768xbf16, #tpu.memory_space<vmem>>, vector<4x384xbf16>,
    %c1_63 = arith.constant 1 : index
    %c0_64 = arith.constant 0 : index
    %c37_65 = arith.constant 37 : index
    %48 = vector.load %arg0[%c1_63, %c0_64, %c37_65] : memref<2x4x432xbf16, #tpu.memory_space<vmem>>, vector<1x4x384xbf16>
    %49 = vector.shape_cast %48 : vector<1x4x384xbf16> to vector<4x384xbf16>
    %c28_66 = arith.constant 28 : index
    %c384_67 = arith.constant 384 : index
    %50 = vector.load %arg4[%c28_66, %c384_67] : memref<36x768xbf16, #tpu.memory_space<vmem>>, vector<4x384xbf16>
    tpu.vector_store %arg4[%c28_66, %c384_67], %49 {strides = array<i32>} : memref<36x768xbf16, #tpu.memory_space<vmem>>, vector<4x384xbf16>,
    %c1_68 = arith.constant 1 : index
    %c0_69 = arith.constant 0 : index
    %c38_70 = arith.constant 38 : index
    %51 = vector.load %arg0[%c1_68, %c0_69, %c38_70] : memref<2x4x432xbf16, #tpu.memory_space<vmem>>, vector<1x4x384xbf16>
    %52 = vector.shape_cast %51 : vector<1x4x384xbf16> to vector<4x384xbf16>
    %c32_71 = arith.constant 32 : index
    %c384_72 = arith.constant 384 : index
    %53 = vector.load %arg4[%c32_71, %c384_72] : memref<36x768xbf16, #tpu.memory_space<vmem>>, vector<4x384xbf16>
    tpu.vector_store %arg4[%c32_71, %c384_72], %52 {strides = array<i32>} : memref<36x768xbf16, #tpu.memory_space<vmem>>, vector<4x384xbf16>,
    %c0_73 = arith.constant 0 : index
    %c0_74 = arith.constant 0 : index
    %54 = vector.load %arg2[%c0_73, %c0_74] : memref<8x1xf32, #tpu.memory_space<vmem>>, vector<8x1xf32>
    %55 = vector.shape_cast %54 : vector<8x1xf32> to vector<8x1xf32>
    %56 = vector.broadcast %55 : vector<8x1xf32> to vector<8x768xf32>
    %c0_75 = arith.constant 0 : index
    %c0_76 = arith.constant 0 : index
    %57 = vector.load %arg1[%c0_75, %c0_76] : memref<8x36xbf16, #tpu.memory_space<vmem>>, vector<8x36xbf16>
    %c0_77 = arith.constant 0 : index
    %c0_78 = arith.constant 0 : index
    %58 = vector.load %arg4[%c0_77, %c0_78] : memref<36x768xbf16, #tpu.memory_space<vmem>>, vector<36x768xbf16>
    %cst = arith.constant dense<0.000000e+00> : vector<8x768xf32>
    %59 = tpu.matmul %57, %58, %cst {dimension_numbers = #tpu.dot_dimension_numbers<[1], [0], [0], [1], [0, 0, 1, 1], [], []>} : vector<8x36xbf16>, vector<36x768xbf16>, vector<8x768xf32> -> vector<8x768xf32>
    %60 = arith.addf %59, %56 : vector<8x768xf32>
    %cst_79 = arith.constant 0.000000e+00 : f32
    %61 = vector.broadcast %cst_79 : f32 to vector<8x768xf32>
    %62 = arith.maximumf %60, %61 : vector<8x768xf32>
    %63 = vector.extract_strided_slice %62 {offsets = [0, 0], sizes = [8, 384], strides = [1, 1]} : vector<8x768xf32> to vector<8x384xf32>
    %c0_80 = arith.constant 0 : index
    %c0_81 = arith.constant 0 : index
    %c0_82 = arith.constant 0 : index
    %64 = vector.load %arg3[%c0_80, %c0_81, %c0_82] : memref<2x8x384xf32, #tpu.memory_space<vmem>>, vector<1x8x384xf32>
    %65 = vector.shape_cast %64 : vector<1x8x384xf32> to vector<8x384xf32>
    %66 = vector.shape_cast %63 : vector<8x384xf32> to vector<1x8x384xf32>
    tpu.vector_store %arg3[%c0_80, %c0_81, %c0_82], %66 {strides = array<i32>} : memref<2x8x384xf32, #tpu.memory_space<vmem>>, vector<1x8x384xf32>,
    %67 = vector.extract_strided_slice %62 {offsets = [0, 384], sizes = [8, 384], strides = [1, 1]} : vector<8x768xf32> to vector<8x384xf32>
    %c1_83 = arith.constant 1 : index
    %c0_84 = arith.constant 0 : index
    %c0_85 = arith.constant 0 : index
    %68 = vector.load %arg3[%c1_83, %c0_84, %c0_85] : memref<2x8x384xf32, #tpu.memory_space<vmem>>, vector<1x8x384xf32>
    %69 = vector.shape_cast %68 : vector<1x8x384xf32> to vector<8x384xf32>
    %70 = vector.shape_cast %67 : vector<8x384xf32> to vector<1x8x384xf32>
    tpu.vector_store %arg3[%c1_83, %c0_84, %c0_85], %70 {strides = array<i32>} : memref<2x8x384xf32, #tpu.memory_space<vmem>>, vector<1x8x384xf32>,
    return
  }
}

</mosaic_0001>

<bundles_post_ra>
// kernel: tpu_custom_call.1
= control target key start
LH: loop header
LB: loop body
LE: loop exit
PB: predicated region body
PF: predicated region fallthrough
CT: control target
= control target key end

     0   :  { %8 = vsyncpa [#allocation4], 0  ;;  %s1112_s0 = inlined_call_operand.hbm [shape: bf16[2,4,432], index: 0, kind: input, shape index: {}]   ;;  %s1113_s1 = inlined_call_operand.vmem [shape: bf16[8,36], index: 1, kind: input, shape index: {}]   ;;  %s1114_s2 = inlined_call_operand.vmem [shape: f32[8,1], index: 2, kind: input, shape index: {}]   ;;  %s1115_s3 = inlined_call_operand.hbm [shape: f32[2,8,384], index: 3, kind: output, shape index: {}]  }
   0x1   :  { %9 = vsyncpa [#allocation5], 0  ;;  %s956_s12 = smov [#allocation3]   ;;  %s908_s16 = scalar_lea.hbm %s1112_s0, 256 }
   0x2   :  { %s15_s13 = sshll.u32 %s956_s12, 4  ;;  %p909_p0 = scmp.ne.s32.totalorder %s1112_s0, %s908_s16  ;;  %s16_s13 = int_to_ptr.vmem [resolvable:$true] %s15_s13 }
   0x3   :  { %p912_p1 = scmp.lt.u32.totalorder %s908_s16, %s1112_s0 }
   0x5   :  { %p914_p2 = pnand %p912_p1, %p909_p0 }
   0x7   :  { %917 = shalt.err (!%p914_p2)
}
   0x8   :  { %s918_s21 = scalar_lea.vmem %s16_s13, 256  ;;  %p923_p4 = scmp.lt.s32.totalorder %s16_s13, %s16_s13 }
   0x9   :  { %p919_p3 = scmp.ne.s32.totalorder %s16_s13, %s918_s21  ;;  %p924_p5 = scmp.lt.s32.totalorder %s918_s21, %s918_s21 }
   0xb   :  { %p925_p6 = por %p924_p5, %p923_p4 }
   0xd   :  { %p926_p7 = pnand %p925_p6, %p919_p3 }
   0xf   :  { %929 = shalt.err (!%p926_p7)
}
  0x10   :  { %s957_s22 = smov 128   ;;  %s958_s23 = smov 8  }
  0x11   :  { %21 = dma.hbm_to_vmem [thread:$0]  %s1112_s0, 256, %s16_s13, [#allocation4], %s957_s22, %s957_s22, %s958_s23  }
  0x12   :  { %952 = dma.done.wait [#allocation4], 256  }
  0x13   :  { %953 = vsyncadd [#allocation4], 4294967040  ;;  %v57_v0 = vlaneseq  ;;  %v959_v1 = vmov 1983009808   ;;  %v83_v6 = vld [vmem:[#allocation3] sm:$0xff]  ;;  %s960_s26 = smov 126  }
  0x14   :  { %v55_v2 = vunpack.c.l.s4 %v959_v1  ;;  %v30_v8 = vld [vmem:[#allocation3] sm:$0x3f]  ;;  %v85_v9 = vcombine.high %v83_v6, %v83_v6  ;;  %s961_s27 = smov 127   ;;  %v53_v10 = vcombine.low %v83_v6, %v83_v6  ;;  %s962_s0 = smov 110   ;;  %v301_v13 = vld [vmem:[#allocation3 + $0x8] sm:$0x3f] }
  0x15   :  { %v58_v3 = vshrl.u32 %v57_v0, 7  ;;  %835 = vst.sshfl [vmem:[#allocation2] sm:$0xf pattern:$0x76325410] %v30_v8  ;;  %s963_s28 = smov 109   ;;  %v32_v15 = vcombine.high %v30_v8, %v30_v8  ;;  %v303_v16 = vcombine.high %v301_v13, %v301_v13 }
  0x16   :  { %v56_v4 = vunpack.c.0.s8 %v55_v2  ;;  %s964_s29 = smov 108   ;;  %s965_s30 = smov 92   ;;  %v322_v14 = vld [vmem:[#allocation3 + $0x8] sm:$0xff]  ;;  %v968_v22 = vmov 0   ;;  %vm76_vm0 = vcmask 1039360   ;;  %vm138_vm1 = vcmask 900096  }
  0x17   :  { %837 = vst.sshfl [vmem:[#allocation2 + $0xc] sm:$0xf pattern:$0x76325410] %v301_v13  ;;  %s966_s4 = smov 91   ;;  %v324_v17 = vcombine.low %v322_v14, %v322_v14  ;;  %s967_s5 = smov 90   ;;  %v354_v20 = vcombine.high %v322_v14, %v322_v14  ;;  %714 = vmatprep.mubr.bf16.mxu0 %v968_v22  ;;  %755 = vmatprep.mubr.bf16.mxu1 %v968_v22 }
  0x18   :  { %v59_v5 = vsub.s32 %v56_v4, %v58_v3  ;;  %836 = vst.sshfl [vmem:[#allocation2 + $0x8] sm:$0x3 pattern:$0x76325410] %v32_v15  ;;  %879 = vset.pattern.permute.xlu0 %v968_v22  ;;  %v562_v23 = vld [vmem:[%s1114_s2] sm:$0xff]  ;;  %vm74_vm2 = vcmask 1043456  }
  0x19   :  { %838 = vst.sshfl [vmem:[#allocation2 + $0x14] sm:$0x3 pattern:$0x76325410] %v303_v16  ;;  %vm107_vm3 = vcmask 1031168   ;;  %vm169_vm4 = vcmask 891904  }
  0x1a   :  { %v92_v7 = vrot.slane %v83_v6, %v59_v5  ;;  %v99_v11 = vrot.slane %v85_v9, %v59_v5  ;;  %v60_v12 = vrot.slane %v53_v10, %v59_v5  ;;  %v338_v18 = vrot.slane %v322_v14, %v59_v5 }
  0x1b   :  { %v331_v19 = vrot.slane %v324_v17, %v59_v5  ;;  %v368_v21 = vrot.slane %v354_v20, %v59_v5  ;;  %vm200_vm5 = vcmask 883712   ;;  %vm231_vm6 = vcmask 752640  }
  0x1c   :  { %100 = vrot.lane.b32.xlu1 %v92_v7, %s960_s26  ;;  %70 = vrot.lane.b32.xlu0 %v92_v7, %s961_s27  ;;  %vm262_vm7 = vcmask 744448   ;;  %vm293_vm8 = vcmask 736256   ;;  %vm663_vm9 = vcmask 1041408   ;;  %vm659_vm10 = vcmask 293888  }
  0x20   :  { %133 = vrot.lane.b32.xlu1 %v92_v7, %s962_s0  ;;  %162 = vrot.lane.b32.xlu0 %v92_v7, %s963_s28 }
  0x24   :  { %102 = vrot.lane.b32.xlu1 %v99_v11, %s960_s26  ;;  %68 = vrot.lane.b32.xlu0 %v60_v12, %s961_s27 }
  0x28   :  { %164 = vrot.lane.b32.xlu1 %v99_v11, %s963_s28  ;;  %131 = vrot.lane.b32.xlu0 %v60_v12, %s962_s0 }
  0x2c   :  { %195 = vrot.lane.b32.xlu1 %v92_v7, %s964_s29  ;;  %193 = vrot.lane.b32.xlu0 %v60_v12, %s964_s29 }
  0x30   :  { %226 = vrot.lane.b32.xlu1 %v99_v11, %s965_s30  ;;  %224 = vrot.lane.b32.xlu0 %v92_v7, %s965_s30 }
  0x34   :  { %257 = vrot.lane.b32.xlu1 %v92_v7, %s966_s4  ;;  %255 = vrot.lane.b32.xlu0 %v60_v12, %s966_s4 }
  0x38   :  { %288 = vrot.lane.b32.xlu1 %v99_v11, %s967_s5  ;;  %286 = vrot.lane.b32.xlu0 %v92_v7, %s967_s5 }
  0x3c   :  { %341 = vrot.lane.b32.xlu1 %v338_v18, %s961_s27  ;;  %339 = vrot.lane.b32.xlu0 %v331_v19, %s961_s27 }
  0x40   :  { %371 = vrot.lane.b32.xlu1 %v368_v21, %s960_s26  ;;  %369 = vrot.lane.b32.xlu0 %v338_v18, %s960_s26 }
  0x44   :  { %401 = vrot.lane.b32.xlu1 %v338_v18, %s962_s0  ;;  %399 = vrot.lane.b32.xlu0 %v331_v19, %s962_s0 }
  0x48   :  { %431 = vrot.lane.b32.xlu1 %v368_v21, %s963_s28  ;;  %429 = vrot.lane.b32.xlu0 %v338_v18, %s963_s28 }
  0x4c   :  { %461 = vrot.lane.b32.xlu1 %v338_v18, %s964_s29  ;;  %459 = vrot.lane.b32.xlu0 %v331_v19, %s964_s29 }
  0x50   :  { %491 = vrot.lane.b32.xlu1 %v368_v21, %s965_s30  ;;  %489 = vrot.lane.b32.xlu0 %v338_v18, %s965_s30 }
  0x54   :  { %521 = vrot.lane.b32.xlu1 %v338_v18, %s966_s4  ;;  %519 = vrot.lane.b32.xlu0 %v331_v19, %s966_s4 }
  0x58   :  { %551 = vrot.lane.b32.xlu1 %v368_v21, %s967_s5  ;;  %549 = vrot.lane.b32.xlu0 %v338_v18, %s967_s5 }
  0x5c   :  { %565 = vperm.xlu0 %879, %v562_v23  }
  0x8e   :  { %v101_v24 = vpop.permute.xlu1 %100  ;;  %v71_v25 = vpop.permute.xlu0 %70 }
  0x8f   :  { %v73_v26 = vrot.slane %v71_v25, 4  ;;  %v104_v34 = vrot.slane %v101_v24, 4 }
  0x91   :  { %v78_v27 = vsel %vm76_vm0, %v71_v25, %v73_v26 }
  0x92   :  { %82 = vst [vmem:[#allocation2 + $0x8] sm:$0xc] %v78_v27  ;;  %v134_v28 = vpop.permute.xlu1 %133  ;;  %v163_v29 = vpop.permute.xlu0 %162 }
  0x93   :  { %v136_v30 = vrot.slane %v134_v28, 4  ;;  %v166_v44 = vrot.slane %v163_v29, 4 }
  0x95   :  { %v140_v31 = vsel %vm138_vm1, %v134_v28, %v136_v30 }
  0x96   :  { %144 = vst [vmem:[#allocation2 + $0x20] sm:$0xc] %v140_v31  ;;  %v103_v32 = vpop.permute.xlu1 %102  ;;  %v69_v33 = vpop.permute.xlu0 %68 }
  0x97   :  { %v105_v35 = vrot.slane %v103_v32, 4  ;;  %v72_v36 = vrot.slane %v69_v33, 4 }
  0x99   :  { %v106_v37 = vsel %vm74_vm2, %v104_v34, %v105_v35  ;;  %v109_v38 = vsel %vm107_vm3, %v103_v32, %v105_v35  ;;  %v75_v39 = vsel %vm74_vm2, %v72_v36, %v73_v26 }
  0x9a   :  { %v108_v40 = vsel %vm107_vm3, %v101_v24, %v106_v37  ;;  %113 = vst [vmem:[#allocation2 + $0x20] sm:$0x3] %v109_v38  ;;  %v77_v41 = vsel %vm76_vm0, %v69_v33, %v75_v39  ;;  %v165_v42 = vpop.permute.xlu1 %164  ;;  %v132_v43 = vpop.permute.xlu0 %131 }
  0x9b   :  { %112 = vst [vmem:[#allocation2 + $0x18] sm:$0x33] %v108_v40  ;;  %81 = vst [vmem:[#allocation2] sm:$0xcc] %v77_v41  ;;  %v167_v45 = vrot.slane %v165_v42, 4  ;;  %v135_v46 = vrot.slane %v132_v43, 4 }
  0x9d   :  { %v168_v47 = vsel %vm74_vm2, %v166_v44, %v167_v45  ;;  %v171_v48 = vsel %vm169_vm4, %v165_v42, %v167_v45  ;;  %v137_v49 = vsel %vm74_vm2, %v135_v46, %v136_v30 }
  0x9e   :  { %v170_v50 = vsel %vm169_vm4, %v163_v29, %v168_v47  ;;  %175 = vst [vmem:[#allocation2 + $0x38] sm:$0x3] %v171_v48  ;;  %v139_v51 = vsel %vm138_vm1, %v132_v43, %v137_v49  ;;  %v196_v52 = vpop.permute.xlu1 %195  ;;  %v194_v53 = vpop.permute.xlu0 %193  ;;  %v1072_v48 = vld [vmem:[%s1113_s1] sm:$0xf]  ;;  %s969_s1 = smov [#allocation6]  }
  0x9f   :  { %174 = vst [vmem:[#allocation2 + $0x30] sm:$0x33] %v170_v50  ;;  %143 = vst [vmem:[#allocation2 + $0x18] sm:$0xcc] %v139_v51  ;;  %v198_v54 = vrot.slane %v196_v52, 4  ;;  %v197_v55 = vrot.slane %v194_v53, 4 }
  0xa0   :  { %s823_s9 = sshll.u32 %s969_s1, 4  ;;  %s824_s9 = int_to_ptr.vmem [resolvable:$true] %s823_s9 }
  0xa1   :  { %v202_v56 = vsel %vm200_vm5, %v196_v52, %v198_v54  ;;  %v199_v57 = vsel %vm74_vm2, %v197_v55, %v198_v54  ;;  %s930_s10 = scalar_lea.vmem %s824_s9, 768  ;;  %p935_p9 = scmp.lt.s32.totalorder %s824_s9, %s824_s9 }
  0xa2   :  { %206 = vst [vmem:[#allocation2 + $0x38] sm:$0xc] %v202_v56  ;;  %v201_v58 = vsel %vm200_vm5, %v194_v53, %v199_v57  ;;  %v227_v59 = vpop.permute.xlu1 %226  ;;  %v225_v60 = vpop.permute.xlu0 %224  ;;  %p931_p8 = scmp.ne.s32.totalorder %s824_s9, %s930_s10  ;;  %p936_p10 = scmp.lt.s32.totalorder %s930_s10, %s930_s10 }
  0xa3   :  { %205 = vst [vmem:[#allocation2 + $0x30] sm:$0xcc] %v201_v58  ;;  %v229_v61 = vrot.slane %v227_v59, 4  ;;  %v228_v62 = vrot.slane %v225_v60, 4 }
  0xa4   :  { %p937_p11 = por %p936_p10, %p935_p9 }
  0xa5   :  { %v233_v63 = vsel %vm231_vm6, %v227_v59, %v229_v61  ;;  %v230_v0 = vsel %vm74_vm2, %v228_v62, %v229_v61 }
  0xa6   :  { %237 = vst [vmem:[#allocation2 + $0x50] sm:$0x3] %v233_v63  ;;  %v232_v1 = vsel %vm231_vm6, %v225_v60, %v230_v0  ;;  %v258_v2 = vpop.permute.xlu1 %257  ;;  %v256_v3 = vpop.permute.xlu0 %255  ;;  %v884_v4 = vld [vmem:[#allocation2 + $0x4] ss:$24 sps:$4 sm:$0xff]   ;;  %v886_v5 = vld [vmem:[#allocation2] ss:$24 sps:$4 sm:$0xff]   ;;  %p938_p12 = pnand %p937_p11, %p931_p8 }
  0xa7   :  { %236 = vst [vmem:[#allocation2 + $0x48] sm:$0x33] %v232_v1  ;;  %v260_v6 = vrot.slane %v258_v2, 4  ;;  %v259_v7 = vrot.slane %v256_v3, 4  ;;  %682 = vmatprep.subr.bf16.mxu0 %v884_v4 }
  0xa8   :  { %683 = vmatpush1.bf16.msra.mxu0 %v886_v5 }
  0xa9   :  { %v264_v8 = vsel %vm262_vm7, %v258_v2, %v260_v6  ;;  %v261_v9 = vsel %vm74_vm2, %v259_v7, %v260_v6 }
  0xaa   :  { %268 = vst [vmem:[#allocation2 + $0x50] sm:$0xc] %v264_v8  ;;  %v263_v10 = vsel %vm262_vm7, %v256_v3, %v261_v9  ;;  %v289_v11 = vpop.permute.xlu1 %288  ;;  %v287_v12 = vpop.permute.xlu0 %286 }
  0xab   :  { %267 = vst [vmem:[#allocation2 + $0x48] sm:$0xcc] %v263_v10  ;;  %v291_v13 = vrot.slane %v289_v11, 4  ;;  %v290_v14 = vrot.slane %v287_v12, 4 }
  0xad   :  { %v295_v15 = vsel %vm293_vm8, %v289_v11, %v291_v13  ;;  %v292_v16 = vsel %vm74_vm2, %v290_v14, %v291_v13 }
  0xae   :  { %299 = vst [vmem:[#allocation2 + $0x68] sm:$0x3] %v295_v15  ;;  %v294_v17 = vsel %vm293_vm8, %v287_v12, %v292_v16  ;;  %v342_v18 = vpop.permute.xlu1 %341  ;;  %v340_v19 = vpop.permute.xlu0 %339 }
  0xaf   :  { %298 = vst [vmem:[#allocation2 + $0x60] sm:$0x33] %v294_v17  ;;  %v344_v20 = vrot.slane %v342_v18, 4  ;;  %v343_v21 = vrot.slane %v340_v19, 4 }
  0xb1   :  { %v347_v23 = vsel %vm76_vm0, %v342_v18, %v344_v20  ;;  %v345_v24 = vsel %vm74_vm2, %v343_v21, %v344_v20 }
  0xb2   :  { %351 = vst [vmem:[#allocation2 + $0x14] sm:$0xc] %v347_v23  ;;  %v346_v25 = vsel %vm76_vm0, %v340_v19, %v345_v24  ;;  %v372_v26 = vpop.permute.xlu1 %371  ;;  %v370_v27 = vpop.permute.xlu0 %369  ;;  %v887_v28 = vld [vmem:[#allocation2 + $0x34] ss:$24 sps:$4 sm:$0xff]   ;;  %v889_v29 = vld [vmem:[#allocation2 + $0x30] ss:$24 sps:$4 sm:$0xff]  }
  0xb3   :  { %350 = vst [vmem:[#allocation2 + $0xc] sm:$0xcc] %v346_v25  ;;  %v374_v30 = vrot.slane %v372_v26, 4  ;;  %v373_v31 = vrot.slane %v370_v27, 4  ;;  %684 = vmatprep.subr.bf16.mxu0 %v887_v28 }
  0xb4   :  { %685 = vmatpush1.bf16.msra.mxu0 %v889_v29 }
  0xb5   :  { %v377_v32 = vsel %vm107_vm3, %v372_v26, %v374_v30  ;;  %v375_v33 = vsel %vm74_vm2, %v373_v31, %v374_v30 }
  0xb6   :  { %381 = vst [vmem:[#allocation2 + $0x2c] sm:$0x3] %v377_v32  ;;  %v376_v34 = vsel %vm107_vm3, %v370_v27, %v375_v33  ;;  %v402_v35 = vpop.permute.xlu1 %401  ;;  %v400_v36 = vpop.permute.xlu0 %399  ;;  %v581_v37 = vld [vmem:[#allocation2 + $0x60] sm:$0x33]  ;;  %v903_v27 = vld [vmem:[#allocation2 + $0x38] ss:$24 sps:$4 sm:$0xff]  }
  0xb7   :  { %380 = vst [vmem:[#allocation2 + $0x24] sm:$0x33] %v376_v34  ;;  %v404_v38 = vrot.slane %v402_v35, 4  ;;  %v403_v39 = vrot.slane %v400_v36, 4  ;;  %v852_v40 = vcombine.high %v581_v37, %v581_v37  ;;  %v851_v41 = vcombine.low %v581_v37, %v581_v37 }
  0xb9   :  { %v407_v42 = vsel %vm138_vm1, %v402_v35, %v404_v38  ;;  %v405_v43 = vsel %vm74_vm2, %v403_v39, %v404_v38  ;;  %857 = vmatprep.subr.msk.bf16.mxu0 %vm663_vm9, %v852_v40  ;;  %v665_v44 = vsel %vm663_vm9, %v851_v41, 0 }
  0xba   :  { %411 = vst [vmem:[#allocation2 + $0x2c] sm:$0xc] %v407_v42  ;;  %v406_v45 = vsel %vm138_vm1, %v400_v36, %v405_v43  ;;  %v432_v46 = vpop.permute.xlu1 %431  ;;  %v430_v47 = vpop.permute.xlu0 %429  ;;  %687 = vmatpush1.bf16.msra.mxu0 %v665_v44  ;;  %v570_v60 = vld [vmem:[#allocation2 + $0x8] sm:$0xff] }
  0xbb   :  { %410 = vst [vmem:[#allocation2 + $0x24] sm:$0xcc] %v406_v45  ;;  %v434_v49 = vrot.slane %v432_v46, 4  ;;  %v433_v50 = vrot.slane %v430_v47, 4 }
  0xbd   :  { %v437_v51 = vsel %vm169_vm4, %v432_v46, %v434_v49  ;;  %v435_v52 = vsel %vm74_vm2, %v433_v50, %v434_v49  ;;  %858 = vmatmul.mubr.msk.bf16.vlgmr.msra.gmra.mrb[0].mxu0 %vm659_vm10, %v1072_v48 }
  0xbe   :  { %441 = vst [vmem:[#allocation2 + $0x44] sm:$0x3] %v437_v51  ;;  %v436_v53 = vsel %vm169_vm4, %v430_v47, %v435_v52  ;;  %v462_v54 = vpop.permute.xlu1 %461  ;;  %v460_v55 = vpop.permute.xlu0 %459  ;;  %796 = vmatprep.mubr.bf16.mxu0 %v968_v22 }
  0xbf   :  { %440 = vst [vmem:[#allocation2 + $0x3c] sm:$0x33] %v436_v53  ;;  %v464_v56 = vrot.slane %v462_v54, 4  ;;  %v463_v57 = vrot.slane %v460_v55, 4 }
  0xc1   :  { %v467_v58 = vsel %vm200_vm5, %v462_v54, %v464_v56  ;;  %v465_v59 = vsel %vm74_vm2, %v463_v57, %v464_v56  ;;  %v897_v22 = vld [vmem:[#allocation2 + $0x14] ss:$24 sps:$4 sm:$0xff]  }
  0xc2   :  { %471 = vst [vmem:[#allocation2 + $0x44] sm:$0xc] %v467_v58  ;;  %v466_v61 = vsel %vm200_vm5, %v460_v55, %v465_v59  ;;  %v492_v62 = vpop.permute.xlu1 %491  ;;  %v490_v63 = vpop.permute.xlu0 %489  ;;  %v573_v0 = vld [vmem:[#allocation2 + $0x20] sm:$0xff]  ;;  %v895_v4 = vld [vmem:[#allocation2 + $0x10] ss:$24 sps:$4 sm:$0xff]   ;;  %764 = vmatprep.subr.bf16.mxu0 %v897_v22 }
  0xc3   :  { %v893_v1 = vld [vmem:[#allocation2 + $0xc] ss:$24 sps:$4 sm:$0xff]   ;;  %470 = vst [vmem:[#allocation2 + $0x3c] sm:$0xcc] %v466_v61  ;;  %v494_v2 = vrot.slane %v492_v62, 4  ;;  %v493_v3 = vrot.slane %v490_v63, 4  ;;  %v841_v5 = vcombine.low %v570_v60, %v573_v0  ;;  %765 = vmatpush1.bf16.msra.mxu0 %v895_v4 }
  0xc4   :  { %723 = vmatprep.subr.bf16.mxu1 %v893_v1 }
  0xc5   :  { %v497_v6 = vsel %vm231_vm6, %v492_v62, %v494_v2  ;;  %v495_v7 = vsel %vm74_vm2, %v493_v3, %v494_v2  ;;  %724 = vmatpush1.bf16.msra.mxu1 %v841_v5 }
  0xc6   :  { %501 = vst [vmem:[#allocation2 + $0x5c] sm:$0x3] %v497_v6  ;;  %v496_v8 = vsel %vm231_vm6, %v490_v63, %v495_v7  ;;  %v522_v9 = vpop.permute.xlu1 %521  ;;  %v520_v10 = vpop.permute.xlu0 %519 }
  0xc7   :  { %500 = vst [vmem:[#allocation2 + $0x54] sm:$0x33] %v496_v8  ;;  %v524_v11 = vrot.slane %v522_v9, 4  ;;  %v523_v12 = vrot.slane %v520_v10, 4 }
  0xc9   :  { %v527_v13 = vsel %vm262_vm7, %v522_v9, %v524_v11  ;;  %v525_v14 = vsel %vm74_vm2, %v523_v12, %v524_v11 }
  0xca   :  { %531 = vst [vmem:[#allocation2 + $0x5c] sm:$0xc] %v527_v13  ;;  %v526_v15 = vsel %vm262_vm7, %v520_v10, %v525_v14  ;;  %v552_v16 = vpop.permute.xlu1 %551  ;;  %v550_v17 = vpop.permute.xlu0 %549 }
  0xcb   :  { %530 = vst [vmem:[#allocation2 + $0x54] sm:$0xcc] %v526_v15  ;;  %v554_v18 = vrot.slane %v552_v16, 4  ;;  %v553_v19 = vrot.slane %v550_v17, 4 }
  0xcd   :  { %v557_v20 = vsel %vm293_vm8, %v552_v16, %v554_v18  ;;  %v555_v21 = vsel %vm74_vm2, %v553_v19, %v554_v18 }
  0xce   :  { %561 = vst [vmem:[#allocation2 + $0x74] sm:$0x3] %v557_v20  ;;  %v556_v23 = vsel %vm293_vm8, %v550_v17, %v555_v21 }
  0xcf   :  { %560 = vst [vmem:[#allocation2 + $0x6c] sm:$0x33] %v556_v23 }
  0xd1   :  { %v902_v26 = vld [vmem:[#allocation2 + $0x44] ss:$24 sps:$4 sm:$0xff]  }
  0xd2   :  { %v898_v24 = vld [vmem:[#allocation2 + $0x3c] ss:$24 sps:$4 sm:$0xff]   ;;  %v900_v25 = vld [vmem:[#allocation2 + $0x40] ss:$24 sps:$4 sm:$0xff]   ;;  %766 = vmatprep.subr.bf16.mxu0 %v902_v26 }
  0xd3   :  { %725 = vmatprep.subr.bf16.mxu1 %v898_v24  ;;  %767 = vmatpush1.bf16.msra.mxu0 %v900_v25 }
  0xd4   :  { %726 = vmatpush1.bf16.msra.mxu1 %v903_v27 }
  0xd6   :  { %v582_v28 = vld [vmem:[#allocation2 + $0x68] sm:$0x33]  ;;  %v583_v29 = vld [vmem:[#allocation2 + $0x70] sm:$0x33] }
  0xd7   :  { %v854_v30 = vcombine.high %v582_v28, %v582_v28  ;;  %v856_v31 = vcombine.high %v583_v29, %v583_v29  ;;  %v853_v32 = vcombine.low %v582_v28, %v582_v28  ;;  %v855_v33 = vcombine.low %v583_v29, %v583_v29 }
  0xd9   :  { %859 = vmatprep.subr.msk.bf16.mxu1 %vm663_vm9, %v854_v30  ;;  %861 = vmatprep.subr.msk.bf16.mxu0 %vm663_vm9, %v856_v31  ;;  %v671_v34 = vsel %vm663_vm9, %v853_v32, 0  ;;  %v677_v35 = vsel %vm663_vm9, %v855_v33, 0 }
  0xda   :  { %728 = vmatpush1.bf16.msra.mxu1 %v671_v34  ;;  %769 = vmatpush1.bf16.msra.mxu0 %v677_v35 }
  0xdb   :  { %v566_v36 = vpop.permute.xlu0 %565 }
  0xdd   :  { %860 = vmatmul.mubr.msk.bf16.vlgmr.msra.gmra.mrb[0].mxu1 %vm659_vm10, %v1072_v48  ;;  %862 = vmatmul.mubr.msk.bf16.vlgmr.msra.gmra.mrb[4].mxu0 %vm659_vm10, %v1072_v48 }
 0x190   :  { %v716_v37 = vpop.f32.mrb[0].mxu0 }
 0x191   :  { %v718_v38 = vpop.f32.mrb[1].mxu0  ;;  %v717_v39 = vadd.f32 %v716_v37, %v566_v36 }
 0x192   :  { %v720_v40 = vpop.f32.mrb[2].mxu0  ;;  %v719_v41 = vadd.f32 %v718_v38, %v566_v36 }
 0x193   :  { %v805_v42 = vmax.f32 %v717_v39, 0.0  ;;  %v721_v43 = vpop.f32.mrb[3].mxu0 }
 0x194   :  { %v806_v44 = vmax.f32 %v719_v41, 0.0 }
 0x195   :  { %811 = vst [vmem:[#allocation6] sm:$0xff] %v805_v42 }
 0x196   :  { %812 = vst [vmem:[#allocation6 + $0x8] sm:$0xff] %v806_v44 }
 0x1b0   :  { %v757_v45 = vpop.f32.mrb[0].mxu1  ;;  %v798_v46 = vpop.f32.mrb[4].mxu0 }
 0x1b1   :  { %v758_v47 = vadd.f32 %v757_v45, %v566_v36  ;;  %v799_v49 = vadd.f32 %v798_v46, %v566_v36  ;;  %v759_v50 = vpop.f32.mrb[1].mxu1  ;;  %v800_v51 = vpop.f32.mrb[5].mxu0 }
 0x1b2   :  { %v760_v48 = vadd.f32 %v759_v50, %v566_v36  ;;  %v801_v52 = vadd.f32 %v800_v51, %v566_v36  ;;  %v761_v53 = vpop.f32.mrb[2].mxu1  ;;  %v802_v54 = vpop.f32.mrb[6].mxu0 }
 0x1b3   :  { %v807_v55 = vmax.f32 %v758_v47, 0.0  ;;  %v809_v56 = vmax.f32 %v799_v49, 0.0  ;;  %v762_v57 = vpop.f32.mrb[3].mxu1  ;;  %v803_v58 = vpop.f32.mrb[7].mxu0 }
 0x1b4   :  { %v808_v59 = vmax.f32 %v760_v48, 0.0  ;;  %v810_v60 = vmax.f32 %v801_v52, 0.0 }
 0x1b5   :  { %813 = vst [vmem:[#allocation6 + $0x10] sm:$0xff] %v807_v55  ;;  %816 = vst [vmem:[#allocation6 + $0x20] sm:$0xff] %v809_v56 }
 0x1b6   :  { %815 = vst [vmem:[#allocation6 + $0x18] sm:$0xff] %v808_v59  ;;  %817 = vst [vmem:[#allocation6 + $0x28] sm:$0xff] %v810_v60 }
 0x1b7   :  { %941 = shalt.err (!%p938_p12)
}
 0x1b8   :  { %s942_s13 = scalar_lea.hbm %s1115_s3, 768 }
 0x1b9   :  { %p943_p13 = scmp.ne.s32.totalorder %s1115_s3, %s942_s13  ;;  %p946_p0 = scmp.lt.u32.totalorder %s942_s13, %s1115_s3 }
 0x1bb   :  { %p948_p1 = pnand %p946_p0, %p943_p13 }
 0x1bd   :  { %951 = shalt.err (!%p948_p1)
}
 0x1be   :  { %s970_s18 = smov 384   ;;  %s971_s19 = smov 24  }
 0x1bf   :  { %829 = dma.vmem_to_hbm [thread:$0]  %s824_s9, 768, %s1115_s3, [#allocation5], %s970_s18, %s970_s18, %s971_s19  }
 0x1c0   :  { %954 = dma.done.wait [#allocation5], 768  }
 0x1c1   :  { %955 = vsyncadd [#allocation5], 4294966528 }
 0x1c2   :  { %833 = vsyncpa [#allocation4], 1 }
 0x1c3   :  { %834 = vsyncpa [#allocation5], 1 }

</bundles_post_ra>
